<compile_context>
chip_gen: v6e
topology: v6e:2x2x1
jax: 0.10.0
libtpu: 0.0.40
codegen_flags: <defaults>
</compile_context>

<pallas_src>
import jax
import jax.numpy as jnp
from jax import lax
from jax.experimental import pallas as pl
from jax.experimental.pallas import tpu as pltpu


def _round_up(x, m):
    return (x + m - 1) // m * m


def _tpu_vmem_bytes():
    """Physical VMEM per TensorCore; conservative fallback if the query fails."""
    try:
        return int(pltpu.get_tpu_info().vmem_capacity_bytes)
    except Exception:
        return 64 * 1024 * 1024  # v7x worst case


def _vmem_estimate(tile_nc, C, Ns_pad):
    """Rough per-step VMEM footprint (bytes), assuming double-buffered I/O."""
    slab = Ns_pad * tile_nc
    inter = slab * (3 * 4 + 2)                 # logits_t / e / acs_t (f32) + bf16 copy
    io = 2 * 2 * C * tile_nc * 4               # xc + out blocks, double-buffered, f32
    fss = 2 * 2 * C * Ns_pad * 2               # f2t + f3 blocks, double-buffered, bf16
    small = 4 * C * tile_nc * 4 + 4 * C * C * 2 + 4 * C * 4 + Ns_pad * 8
    return inter + io + fss + small


def _sa_fusion_kernel(xc_ref, f2t_ref, f3_ref, mask_ref,
                      w1_ref, b1_ref, wr_ref, br_ref, out_ref):
    fcc = xc_ref[0]                                    # (C, tile_nc) f32
    fcc_b = fcc.astype(jnp.bfloat16)

    # conv_f1: bf16 MXU operands, f32 accumulation.
    f1 = jnp.dot(w1_ref[...], fcc_b,
                 preferred_element_type=jnp.float32) + b1_ref[...]        # (C, tile_nc)

    # logits^T[q, p] = sum_c f2[c, q] * f1[c, p]  -> (Ns_pad, tile_nc)
    logits_t = jnp.dot(f2t_ref[0], f1.astype(jnp.bfloat16),
                       preferred_element_type=jnp.float32)
    logits_t = logits_t + mask_ref[...]                # additive key-padding mask

    # Numerically-stable softmax over keys (sublane axis), all f32.
    m = jnp.max(logits_t, axis=0, keepdims=True)       # (1, tile_nc)
    e = jnp.exp(logits_t - m)
    s = jnp.sum(e, axis=0, keepdims=True)
    acs_t = e * pl.reciprocal(s, approx=True)          # (Ns_pad, tile_nc)

    # frs[c, p] = sum_q f3[c, q] * Acs^T[q, p]  -> (C, tile_nc)
    frs = jnp.dot(f3_ref[0], acs_t.astype(jnp.bfloat16),
                  preferred_element_type=jnp.float32)

    # conv_frs + residual add.
    out = jnp.dot(wr_ref[...], frs.astype(jnp.bfloat16),
                  preferred_element_type=jnp.float32) + br_ref[...] + fcc
    out_ref[0] = out.astype(out_ref.dtype)


def sa_fusion(x_fcc, x_fss, params, *, tile_nc=None):
    """x_fcc: (B, C, Hc, Wc), x_fss: (B, C, Hs, Ws) in NCHW (matching PyTorch)."""
    B, C, Hc, Wc = x_fcc.shape
    Bs, Cs, Hs, Ws = x_fss.shape
    assert B == Bs and C == Cs
    Nc, Ns = Hc * Wc, Hs * Ws

    w1, b1, w2, b2, w3, b3, wr, br = params

    # ---- lane-friendly padding / generation-aware tiling -------------------
    Ns_pad = _round_up(Ns, 128)                        # lane-dense keys

    vmem_phys = _tpu_vmem_bytes()
    vmem_limit = min(vmem_phys * 3 // 4, 100 * 1024 * 1024)   # 48 MiB v7x, 96 MiB v5e/v6e
    budget = int(0.8 * vmem_limit)

    if tile_nc is None:
        cap = 1024 if vmem_limit >= 96 * 1024 * 1024 else 512
        tile_nc = min(_round_up(Nc, 128), cap)
        while tile_nc > 128 and _vmem_estimate(tile_nc, C, Ns_pad) > budget:
            tile_nc -= 128
    Nc_pad = _round_up(Nc, tile_nc)
    n_nc_tiles = Nc_pad // tile_nc

    xc = x_fcc.reshape(B, C, Nc)
    if Nc_pad != Nc:
        xc = jnp.pad(xc, ((0, 0), (0, 0), (0, Nc_pad - Nc)))
    xs = x_fss.reshape(B, C, Ns)
    if Ns_pad != Ns:
        xs = jnp.pad(xs, ((0, 0), (0, 0), (0, Ns_pad - Ns)))

    # ---- hoisted x_fss 1x1 convs (once per batch, not once per Nc tile) ----
    hp = lax.Precision.HIGHEST
    f2t = jnp.einsum('oc,bcn->bno', w2, xs, precision=hp) + b2.reshape(1, 1, C)
    f3 = jnp.einsum('oc,bcn->bon', w3, xs, precision=hp) + b3.reshape(1, C, 1)
    f2t_b = f2t.astype(jnp.bfloat16)                   # (B, Ns_pad, C)
    f3_b = f3.astype(jnp.bfloat16)                     # (B, C, Ns_pad)

    # Padded key rows of f2t equal the bias, so the logits mask is mandatory.
    mask = jnp.where(jnp.arange(Ns_pad) < Ns, 0.0, -1e30)
    mask = mask.astype(jnp.float32).reshape(Ns_pad, 1)

    w1b = w1.astype(jnp.bfloat16)
    wrb = wr.astype(jnp.bfloat16)

    cost = pl.CostEstimate(
        flops=int(2 * B * Nc_pad * (2 * C * C + 2 * C * Ns_pad)),
        transcendentals=int(B * Nc_pad * Ns_pad),
        bytes_accessed=int(2 * B * C * Nc_pad * 4            # xc in + out
                           + B * Ns_pad * C * 2 * 2          # f2t + f3 (bf16)
                           + 2 * C * C * 2 + 2 * C * 4       # weights + biases
                           + Ns_pad * 4),
    )

    def inv2d(shape):
        return pl.BlockSpec(shape, lambda b, t: (0, 0))

    out = pl.pallas_call(
        _sa_fusion_kernel,
        out_shape=jax.ShapeDtypeStruct((B, C, Nc_pad), x_fcc.dtype),
        grid_spec=pltpu.PrefetchScalarGridSpec(
            num_scalar_prefetch=0,
            grid=(B, n_nc_tiles),
            in_specs=[
                pl.BlockSpec((1, C, tile_nc), lambda b, t: (b, 0, t)),   # x_fcc tile
                pl.BlockSpec((1, Ns_pad, C), lambda b, t: (b, 0, 0)),    # f2^T (bf16)
                pl.BlockSpec((1, C, Ns_pad), lambda b, t: (b, 0, 0)),    # f3   (bf16)
                inv2d((Ns_pad, 1)),                                      # key mask
                inv2d((C, C)), inv2d((C, 1)),                            # w1 (bf16), b1
                inv2d((C, C)), inv2d((C, 1)),                            # wr (bf16), br
            ],
            out_specs=pl.BlockSpec((1, C, tile_nc), lambda b, t: (b, 0, t)),
        ),
        compiler_params=pltpu.CompilerParams(
            dimension_semantics=("parallel", "parallel"),
            vmem_limit_bytes=int(vmem_limit)),
        cost_estimate=cost,
    )(xc, f2t_b, f3_b, mask, w1b, b1, wrb, br)

    if Nc_pad != Nc:
        out = out[:, :, :Nc]
    return out.reshape(B, C, Hc, Wc)


def init_params(key, in_channel, out_channel):
    """Deterministic init mimicking nn.Conv2d default (uniform +/- 1/sqrt(fan_in))."""
    bound = 1.0 / jnp.sqrt(jnp.float32(in_channel))    # 1x1 kernel -> fan_in = C_in
    keys = jax.random.split(key, 8)
    params = []
    for i in range(4):
        w = jax.random.uniform(keys[2 * i], (out_channel, in_channel),
                               jnp.float32, -bound, bound)
        b = jax.random.uniform(keys[2 * i + 1], (out_channel, 1),
                               jnp.float32, -bound, bound)
        params += [w, b]
    return tuple(params)


def sa_fusion_reference(x_fcc, x_fss, params, *, mxu_bf16=True):
    """Pure-JAX reference mirroring the PyTorch forward.

    With mxu_bf16=True it mirrors the kernel's bf16 MXU operands (f32
    accumulation) on all in-kernel matmuls, isolating kernel bugs from the
    intentional reduced-precision MXU path.  The hoisted f2/f3 convs stay f32,
    exactly as in the wrapper.
    """
    B, C, Hc, Wc = x_fcc.shape
    _, Cs, Hs, Ws = x_fss.shape
    Nc, Ns = Hc * Wc, Hs * Ws
    w1, b1, w2, b2, w3, b3, wr, br = params
    xc = x_fcc.reshape(B, C, Nc)
    xs = x_fss.reshape(B, Cs, Ns)
    hp = lax.Precision.HIGHEST

    def mm(a):
        return a.astype(jnp.bfloat16) if mxu_bf16 else a

    f1 = jnp.einsum('oc,bcn->bon', mm(w1), mm(xc),
                    preferred_element_type=jnp.float32, precision=hp) + b1[None]
    f2 = jnp.einsum('oc,bcn->bon', w2, xs, precision=hp) + b2[None]
    f3 = jnp.einsum('oc,bcn->bon', w3, xs, precision=hp) + b3[None]
    logits = jnp.einsum('bcp,bcq->bpq', mm(f1), mm(f2),
                        preferred_element_type=jnp.float32, precision=hp)
    acs = jax.nn.softmax(logits, axis=-1)
    frs = jnp.einsum('bcq,bpq->bcp', mm(f3), mm(acs),
                     preferred_element_type=jnp.float32, precision=hp)
    out = jnp.einsum('oc,bcn->bon', mm(wr), mm(frs),
                     preferred_element_type=jnp.float32, precision=hp) + br[None] + xc
    return out.reshape(B, C, Hc, Wc)


if __name__ == "__main__":
    key = jax.random.PRNGKey(0)
    k_cc, k_ss, k_p = jax.random.split(key, 3)

    B, C = 2, 8
    Hc, Wc = 16, 16   # x_fcc spatial -> Nc = 256
    Hs, Ws = 8, 8     # x_fss spatial -> Ns = 64 (exercises the Ns->128 padding + mask)

    x_fcc = jax.random.normal(k_cc, (B, C, Hc, Wc), jnp.float32)
    x_fss = jax.random.normal(k_ss, (B, C, Hs, Ws), jnp.float32)
    params = init_params(k_p, C, C)   # in_channel == out_channel (required by .view)

    ref = sa_fusion_reference(x_fcc, x_fss, params, mxu_bf16=True)

    # Default tile size (single Nc tile at these shapes).
    out = jax.block_until_ready(sa_fusion(x_fcc, x_fss, params))
    assert out.shape == (B, C, Hc, Wc)
    assert jnp.allclose(out, ref, rtol=1e-2, atol=1e-2), "mismatch vs JAX reference"

    # Forced small tile -> exercises the multi-tile Nc grid axis.
    out2 = jax.block_until_ready(sa_fusion(x_fcc, x_fss, params, tile_nc=128))
    assert jnp.allclose(out2, ref, rtol=1e-2, atol=1e-2), "mismatch (tiled) vs reference"

    print("KERNEL_OK")
</pallas_src>

<mosaic_0001>
module attributes {stable_mosaic.version = 11 : i64} {
  func.func @_sa_fusion_kernel(%arg0: i32, %arg1: i32, %arg2: memref<1x8x256xf32, #tpu.memory_space<vmem>>, %arg3: memref<1x128x8xbf16, #tpu.memory_space<vmem>>, %arg4: memref<1x8x128xbf16, #tpu.memory_space<vmem>>, %arg5: memref<128x1xf32, #tpu.memory_space<vmem>>, %arg6: memref<8x8xbf16, #tpu.memory_space<vmem>>, %arg7: memref<8x1xf32, #tpu.memory_space<vmem>>, %arg8: memref<8x8xbf16, #tpu.memory_space<vmem>>, %arg9: memref<8x1xf32, #tpu.memory_space<vmem>>, %arg10: memref<1x8x256xf32, #tpu.memory_space<vmem>>) attributes {dimension_semantics = [#tpu.dimension_semantics<parallel>, #tpu.dimension_semantics<parallel>], iteration_bounds = array<i64: 2, 1>, scalar_prefetch = 0 : i64, scratch_operands = 0 : i64, tpu.core_type = #tpu.core_type<tc>, window_params = [{transform_indices = @transform_0, window_bounds = array<i64: 1, 8, 256>}, {transform_indices = @transform_1, window_bounds = array<i64: 1, 128, 8>}, {transform_indices = @transform_2, window_bounds = array<i64: 1, 8, 128>}, {pipeline_mode = #tpu.pipeline_mode<synchronous>, transform_indices = @transform_3, window_bounds = array<i64: 128, 1>}, {pipeline_mode = #tpu.pipeline_mode<synchronous>, transform_indices = @transform_4, window_bounds = array<i64: 8, 8>}, {pipeline_mode = #tpu.pipeline_mode<synchronous>, transform_indices = @transform_5, window_bounds = array<i64: 8, 1>}, {pipeline_mode = #tpu.pipeline_mode<synchronous>, transform_indices = @transform_6, window_bounds = array<i64: 8, 8>}, {pipeline_mode = #tpu.pipeline_mode<synchronous>, transform_indices = @transform_7, window_bounds = array<i64: 8, 1>}, {transform_indices = @transform_8, window_bounds = array<i64: 1, 8, 256>}]} {
    %c0 = arith.constant 0 : index
    %c0_0 = arith.constant 0 : index
    %c0_1 = arith.constant 0 : index
    %0 = vector.load %arg2[%c0, %c0_0, %c0_1] : memref<1x8x256xf32, #tpu.memory_space<vmem>>, vector<1x8x256xf32>
    %1 = vector.shape_cast %0 : vector<1x8x256xf32> to vector<8x256xf32>
    %2 = arith.truncf %1 : vector<8x256xf32> to vector<8x256xbf16>
    %c0_2 = arith.constant 0 : index
    %c0_3 = arith.constant 0 : index
    %3 = vector.load %arg6[%c0_2, %c0_3] : memref<8x8xbf16, #tpu.memory_space<vmem>>, vector<8x8xbf16>
    %cst = arith.constant dense<0.000000e+00> : vector<8x256xf32>
    %4 = tpu.matmul %3, %2, %cst {dimension_numbers = #tpu.dot_dimension_numbers<[1], [0], [0], [1], [0, 0, 1, 1], [], []>} : vector<8x8xbf16>, vector<8x256xbf16>, vector<8x256xf32> -> vector<8x256xf32>
    %c0_4 = arith.constant 0 : index
    %c0_5 = arith.constant 0 : index
    %5 = vector.load %arg7[%c0_4, %c0_5] : memref<8x1xf32, #tpu.memory_space<vmem>>, vector<8x1xf32>
    %6 = vector.broadcast %5 : vector<8x1xf32> to vector<8x256xf32>
    %7 = arith.addf %4, %6 : vector<8x256xf32>
    %c0_6 = arith.constant 0 : index
    %c0_7 = arith.constant 0 : index
    %c0_8 = arith.constant 0 : index
    %8 = vector.load %arg3[%c0_6, %c0_7, %c0_8] : memref<1x128x8xbf16, #tpu.memory_space<vmem>>, vector<1x128x8xbf16>
    %9 = vector.shape_cast %8 : vector<1x128x8xbf16> to vector<128x8xbf16>
    %10 = arith.truncf %7 : vector<8x256xf32> to vector<8x256xbf16>
    %cst_9 = arith.constant dense<0.000000e+00> : vector<128x256xf32>
    %11 = tpu.matmul %9, %10, %cst_9 {dimension_numbers = #tpu.dot_dimension_numbers<[1], [0], [0], [1], [0, 0, 1, 1], [], []>} : vector<128x8xbf16>, vector<8x256xbf16>, vector<128x256xf32> -> vector<128x256xf32>
    %c0_10 = arith.constant 0 : index
    %c0_11 = arith.constant 0 : index
    %12 = vector.load %arg5[%c0_10, %c0_11] : memref<128x1xf32, #tpu.memory_space<vmem>>, vector<128x1xf32>
    %13 = vector.broadcast %12 : vector<128x1xf32> to vector<128x256xf32>
    %14 = arith.addf %11, %13 : vector<128x256xf32>
    %cst_12 = arith.constant dense<0xFF800000> : vector<256xf32>
    %15 = vector.multi_reduction <maximumf>, %14, %cst_12 [0] : vector<128x256xf32> to vector<256xf32>
    %16 = vector.shape_cast %15 : vector<256xf32> to vector<1x256xf32>
    %17 = vector.broadcast %16 : vector<1x256xf32> to vector<128x256xf32>
    %18 = arith.subf %14, %17 : vector<128x256xf32>
    %19 = math.exp %18 : vector<128x256xf32>
    %cst_13 = arith.constant dense<0.000000e+00> : vector<256xf32>
    %20 = vector.multi_reduction <add>, %19, %cst_13 [0] : vector<128x256xf32> to vector<256xf32>
    %21 = vector.shape_cast %20 : vector<256xf32> to vector<1x256xf32>
    %22 = tpu.reciprocal %21 {approx = true} : vector<1x256xf32> -> vector<1x256xf32>
    %23 = vector.broadcast %22 : vector<1x256xf32> to vector<128x256xf32>
    %24 = arith.mulf %19, %23 : vector<128x256xf32>
    %c0_14 = arith.constant 0 : index
    %c0_15 = arith.constant 0 : index
    %c0_16 = arith.constant 0 : index
    %25 = vector.load %arg4[%c0_14, %c0_15, %c0_16] : memref<1x8x128xbf16, #tpu.memory_space<vmem>>, vector<1x8x128xbf16>
    %26 = vector.shape_cast %25 : vector<1x8x128xbf16> to vector<8x128xbf16>
    %27 = arith.truncf %24 : vector<128x256xf32> to vector<128x256xbf16>
    %cst_17 = arith.constant dense<0.000000e+00> : vector<8x256xf32>
    %28 = tpu.matmul %26, %27, %cst_17 {dimension_numbers = #tpu.dot_dimension_numbers<[1], [0], [0], [1], [0, 0, 1, 1], [], []>} : vector<8x128xbf16>, vector<128x256xbf16>, vector<8x256xf32> -> vector<8x256xf32>
    %c0_18 = arith.constant 0 : index
    %c0_19 = arith.constant 0 : index
    %29 = vector.load %arg8[%c0_18, %c0_19] : memref<8x8xbf16, #tpu.memory_space<vmem>>, vector<8x8xbf16>
    %30 = arith.truncf %28 : vector<8x256xf32> to vector<8x256xbf16>
    %cst_20 = arith.constant dense<0.000000e+00> : vector<8x256xf32>
    %31 = tpu.matmul %29, %30, %cst_20 {dimension_numbers = #tpu.dot_dimension_numbers<[1], [0], [0], [1], [0, 0, 1, 1], [], []>} : vector<8x8xbf16>, vector<8x256xbf16>, vector<8x256xf32> -> vector<8x256xf32>
    %c0_21 = arith.constant 0 : index
    %c0_22 = arith.constant 0 : index
    %32 = vector.load %arg9[%c0_21, %c0_22] : memref<8x1xf32, #tpu.memory_space<vmem>>, vector<8x1xf32>
    %33 = vector.broadcast %32 : vector<8x1xf32> to vector<8x256xf32>
    %34 = arith.addf %31, %33 : vector<8x256xf32>
    %35 = arith.addf %34, %1 : vector<8x256xf32>
    %c0_23 = arith.constant 0 : index
    %c0_24 = arith.constant 0 : index
    %c0_25 = arith.constant 0 : index
    %36 = vector.load %arg10[%c0_23, %c0_24, %c0_25] : memref<1x8x256xf32, #tpu.memory_space<vmem>>, vector<1x8x256xf32>
    %37 = vector.shape_cast %36 : vector<1x8x256xf32> to vector<8x256xf32>
    %38 = vector.shape_cast %35 : vector<8x256xf32> to vector<1x8x256xf32>
    tpu.vector_store %arg10[%c0_23, %c0_24, %c0_25], %38 {strides = array<i32>} : memref<1x8x256xf32, #tpu.memory_space<vmem>>, vector<1x8x256xf32>,
    return
  }
  func.func @transform_0(%arg0: i32, %arg1: i32) -> (i32, i32, i32) {
    %c0_i32 = arith.constant 0 : i32
    %c0_i32_0 = arith.constant 0 : i32
    return %arg0, %c0_i32, %arg1 : i32, i32, i32
  }
  func.func @transform_1(%arg0: i32, %arg1: i32) -> (i32, i32, i32) {
    %c0_i32 = arith.constant 0 : i32
    %c0_i32_0 = arith.constant 0 : i32
    %c0_i32_1 = arith.constant 0 : i32
    return %arg0, %c0_i32, %c0_i32_0 : i32, i32, i32
  }
  func.func @transform_2(%arg0: i32, %arg1: i32) -> (i32, i32, i32) {
    %c0_i32 = arith.constant 0 : i32
    %c0_i32_0 = arith.constant 0 : i32
    %c0_i32_1 = arith.constant 0 : i32
    return %arg0, %c0_i32, %c0_i32_0 : i32, i32, i32
  }
  func.func @transform_3(%arg0: i32, %arg1: i32) -> (i32, i32) {
    %c0_i32 = arith.constant 0 : i32
    %c0_i32_0 = arith.constant 0 : i32
    %c0_i32_1 = arith.constant 0 : i32
    return %c0_i32, %c0_i32_0 : i32, i32
  }
  func.func @transform_4(%arg0: i32, %arg1: i32) -> (i32, i32) {
    %c0_i32 = arith.constant 0 : i32
    %c0_i32_0 = arith.constant 0 : i32
    %c0_i32_1 = arith.constant 0 : i32
    return %c0_i32, %c0_i32_0 : i32, i32
  }
  func.func @transform_5(%arg0: i32, %arg1: i32) -> (i32, i32) {
    %c0_i32 = arith.constant 0 : i32
    %c0_i32_0 = arith.constant 0 : i32
    %c0_i32_1 = arith.constant 0 : i32
    return %c0_i32, %c0_i32_0 : i32, i32
  }
  func.func @transform_6(%arg0: i32, %arg1: i32) -> (i32, i32) {
    %c0_i32 = arith.constant 0 : i32
    %c0_i32_0 = arith.constant 0 : i32
    %c0_i32_1 = arith.constant 0 : i32
    return %c0_i32, %c0_i32_0 : i32, i32
  }
  func.func @transform_7(%arg0: i32, %arg1: i32) -> (i32, i32) {
    %c0_i32 = arith.constant 0 : i32
    %c0_i32_0 = arith.constant 0 : i32
    %c0_i32_1 = arith.constant 0 : i32
    return %c0_i32, %c0_i32_0 : i32, i32
  }
  func.func @transform_8(%arg0: i32, %arg1: i32) -> (i32, i32, i32) {
    %c0_i32 = arith.constant 0 : i32
    %c0_i32_0 = arith.constant 0 : i32
    return %arg0, %c0_i32, %arg1 : i32, i32, i32
  }
}

</mosaic_0001>

<bundles_post_ra>
// kernel: tpu_custom_call.1
= control target key start
LH: loop header
LB: loop body
LE: loop exit
PB: predicated region body
PF: predicated region fallthrough
CT: control target
= control target key end

     0   :  { %s1969_s0 = inlined_call_operand.vmem [shape: f32[2,8,256], index: 0, kind: input, shape index: {}]   ;;  %s1970_s1 = inlined_call_operand.vmem [shape: bf16[2,128,8], index: 1, kind: input, shape index: {}]   ;;  %s1971_s2 = inlined_call_operand.vmem [shape: bf16[2,8,128], index: 2, kind: input, shape index: {}]   ;;  %s1972_s3 = inlined_call_operand.vmem [shape: f32[128,1], index: 3, kind: input, shape index: {}]   ;;  %s1973_s4 = inlined_call_operand.vmem [shape: bf16[8,8], index: 4, kind: input, shape index: {}]   ;;  %s1974_s5 = inlined_call_operand.vmem [shape: f32[8,1], index: 5, kind: input, shape index: {}]   ;;  %s1975_s6 = inlined_call_operand.vmem [shape: bf16[8,8], index: 6, kind: input, shape index: {}]   ;;  %s1976_s7 = inlined_call_operand.vmem [shape: f32[8,1], index: 7, kind: input, shape index: {}]   ;;  %s1977_s8 = inlined_call_operand.hbm [shape: f32[2,8,256], index: 8, kind: output, shape index: {}]  }
   0x1   :  { %1978 = sst [smem:[#allocation5_spill]] %s1974_s5 }
   0x2   :  { %13 = vsyncpa [#allocation3], 0 }
   0x3   :  { %15 = vsyncpa [#allocation3 + $0x1], 0  ;;  %s1484_s27 = smov 0   ;;  %s1486_s28 = smov 0  }
   0x4   :  { %s1488_s29 = smov 0   ;;  %s1490_s30 = smov 0  }
   0x5   :  { %s1492_s9 = smov 0   ;;  %s1494_s10 = smov 0  }
   0x6 LB: > { %s1185_s11 = sadd.s32 4294967295, %s1435_s10   ;;  %s1186_s12 = sadd.s32 4294967294, %s1435_s10   ;;  %s1435_s10 = sphi %s1494_s10, %s21_s10   ;;  %s1431_s9 = sphi %s1492_s9, %s1986_s9   ;;  %s1427_s30 = sphi %s1490_s30, %s1985_s30   ;;  %s1423_s29 = sphi %s1488_s29, %s1984_s29   ;;  %s1419_s28 = sphi %s1486_s28, %s1983_s28   ;;  %s1415_s27 = sphi %s1484_s27, %s1982_s27  }
   0x7   : > { %s33_s13 = sadd.s32 1, %s1431_s9  ;;  %s227_s14 = sadd.s32 1, %s1423_s29 }
   0x8   : > { %p35_p0 = scmp.ge.s32.totalorder %s33_s13, 2  ;;  %p237_p1 = scmp.ne.s32.totalorder %s1423_s29, %s1419_s28 }
   0x9   : > { %p238_p2 = scmp.eq.s32.totalorder %s1185_s11, 1  ;;  %p243_p3 = scmp.ne.s32.totalorder %s1419_s28, %s1415_s27 }
   0xa   : > { %s1988_s13 = smov (%p35_p0, %s33_s13), 0  ;;  %p244_p5 = scmp.eq.s32.totalorder %s1186_s12, 1 }
   0xb   : > { %p1524_p4 = por %p238_p2, %p237_p1  ;;  %s222_s16 = ssub.s32 %s1431_s9, %s1988_s13 }
   0xc   : > { %p1189_p6 = scmp.ge.s32.totalorder %s1435_s10, 1  ;;  %p225_p7 = scmp.eq.s32.totalorder %s222_s16, 0 }
   0xd   : > { %p1531_p8 = por %p244_p5, %p243_p3  ;;  %p305_p9 = scmp.lt.s32.totalorder %s1435_s10, 3 }
   0xe   : > { %s1537_s18 = scalar_select %p225_p7, %s1423_s29, %s227_s14  }
   0xf   : > { %p306_p10 = pnand %p1189_p6, %p305_p9 }
  0x10   : > { %p353_p11 = scmp.lt.s32.totalorder (!%p306_p10), %s1427_s30, 1  ;;  %s1981_s5 = sld [smem:[#allocation5_spill]] (!%p306_p10) }
  0x11   : > { %309 = sbr.rel (%p306_p10) target bundleno = 1041 (0x411), region = 52  ;;  %s1224_s26 = sshll.u32 (!%p306_p10), %s1427_s30, 8 }
  0x16   : > { %v1437_v0 = vmov 0   ;;  %v378_v1 = vld [vmem:[%s1981_s5] sm:$0xff]  ;;  %s1546_s21 = scalar_select %p353_p11, %s1427_s30, 1  ;;  %v457_v3 = vld [vmem:[%s1972_s3 + $0x18] sm:$0xff]  ;;  %vm388_vm0 = vcmask 1043456   ;;  %vm384_vm1 = vcmask 64512  }
  0x17   : > { %427 = vmatprep.mubr.bf16.mxu0 %v1437_v0  ;;  %1281 = vset.pattern.permute.xlu0 %v1437_v0  ;;  %v454_v2 = vld [vmem:[%s1972_s3] sm:$0xff]  ;;  %v459_v10 = vld [vmem:[%s1972_s3 + $0x28] sm:$0xff]  ;;  %v461_v11 = vld [vmem:[%s1972_s3 + $0x38] sm:$0xff]  ;;  %s1438_s30 = smov [#allocation2]  }
  0x18   : > { %381 = vperm.xlu0 %1281, %v378_v1   ;;  %652 = vmatprep.mubr.bf16.mxu1 %v1437_v0  ;;  %s1222_s24 = sshll.u32 %s1546_s21, 4  ;;  %s1223_s25 = sshll.u32 %s1546_s21, 6  ;;  %v377_v8 = vld [vmem:[%s1973_s4] sm:$0xf]  ;;  %v463_v12 = vld [vmem:[%s1972_s3 + $0x48] sm:$0xff]  ;;  %v465_v13 = vld [vmem:[%s1972_s3 + $0x58] sm:$0xff] }
  0x19   : > { %1282 = vset.pattern.permute.xlu1 %v1437_v0  ;;  %s360_s12 = scalar_lea.vmem %s1969_s0, %s1222_s24  ;;  %s1561_s19 = scalar_lea.vmem %s1970_s1, %s1223_s25  ;;  %v467_v14 = vld [vmem:[%s1972_s3 + $0x68] sm:$0xff]  ;;  %v469_v15 = vld [vmem:[%s1972_s3 + $0x78] sm:$0xff]  ;;  %v456_v17 = vld [vmem:[%s1972_s3 + $0x10] sm:$0xff] }
  0x1a   : > { %v1566_v4 = vld [vmem:[%s360_s12 + $0x8] sm:$0xff]  ;;  %v1568_v5 = vld [vmem:[%s360_s12] sm:$0xff]  ;;  %v460_v19 = vld [vmem:[%s1972_s3 + $0x30] sm:$0xff]  ;;  %s349_s24 = sand.u32 1, %s1419_s28  }
  0x1b   : > { %v376_v6 = vpack.c.bf16 %v1566_v4, %v1566_v4  ;;  %v375_v7 = vpack.c.bf16 %v1568_v5, %v1568_v5  ;;  %v455_v16 = vld [vmem:[%s1972_s3 + $0x8] sm:$0xff]  ;;  %v458_v18 = vld [vmem:[%s1972_s3 + $0x20] sm:$0xff]  ;;  %v464_v21 = vld [vmem:[%s1972_s3 + $0x50] sm:$0xff]  ;;  %s1190_s25 = sshll.u32 %s349_s24, 4  ;;  %s1069_s20 = scalar_lea.sflag [#allocation3], %s349_s24 }
  0x1c   : > { %472 = vperm.xlu0 %1281, %v454_v2   ;;  %477 = vperm.xlu1 %1282, %v455_v16   ;;  %v462_v20 = vld [vmem:[%s1972_s3 + $0x40] sm:$0xff]  ;;  %v468_v23 = vld [vmem:[%s1972_s3 + $0x70] sm:$0xff]  ;;  %v1284_v36 = vld [vmem:[%s1561_s19 + $0x8] sm:$0xff]   ;;  %s351_s11 = scalar_lea.vmem [#allocation2], %s1190_s25 }
  0x1d   : > { %1196 = vmatprep.subr.msk.bf16.mxu0 %vm388_vm0, %v376_v6  ;;  %v390_v9 = vsel %vm388_vm0, %v375_v7, 0  ;;  %v466_v22 = vld [vmem:[%s1972_s3 + $0x60] sm:$0xff]  ;;  %v1285_v37 = vld [vmem:[%s1561_s19 + $0x10] sm:$0xff]   ;;  %v1286_v38 = vld [vmem:[%s1561_s19 + $0x18] sm:$0xff]   ;;  %s1085_s12 = sshll.u32 %s351_s11, 4  ;;  %s1086_s12 = int_to_ptr.vmem [resolvable:$true] %s1085_s12 }
  0x1e   : > { %410 = vmatpush1.bf16.msra.mxu0 %v390_v9  ;;  %v1008_v24 = vld [vmem:[%s1976_s7] sm:$0xff]  ;;  %v1288_v40 = vld [vmem:[%s1561_s19 + $0x28] sm:$0xff]   ;;  %v1289_v41 = vld [vmem:[%s1561_s19 + $0x30] sm:$0xff]   ;;  %s1359_s22 = scalar_lea.vmem %s1086_s12, 256 }
  0x1f   : > { %v1283_v35 = vld [vmem:[%s1561_s19] sm:$0xff]   ;;  %v1290_v42 = vld [vmem:[%s1561_s19 + $0x38] sm:$0xff]   ;;  %p1360_p12 = scmp.ne.s32.totalorder %s1086_s12, %s1359_s22 }
  0x20   : > { %487 = vperm.xlu0 %1281, %v457_v3   ;;  %482 = vperm.xlu1 %1282, %v456_v17   ;;  %v1287_v39 = vld [vmem:[%s1561_s19 + $0x20] sm:$0xff]   ;;  %s1195_s19 = sshll.u32 %s1546_s21, 2 }
  0x21   : > { %1197 = vmatmul.mubr.msk.bf16.vlgmr.msra.gmra.mxu0 %vm384_vm1, %v377_v8  ;;  %s370_s23 = scalar_lea.vmem %s1971_s2, %s1195_s19  ;;  %s1929_s19 = scalar_lea.hbm %s1977_s8, %s1224_s26 }
  0x22   : > { %996 = vmatprep.mubr.bf16.mxu0 %v1437_v0  ;;  %p1361_p13 = pnand %p1360_p12, %p1524_p4 }
  0x24   : > { %497 = vperm.xlu0 %1281, %v459_v10   ;;  %492 = vperm.xlu1 %1282, %v458_v18   ;;  %p1362_p0 = pneg %p1361_p13 }
  0x28   : > { %507 = vperm.xlu0 %1281, %v461_v11   ;;  %502 = vperm.xlu1 %1282, %v460_v19  }
  0x2c   : > { %517 = vperm.xlu0 %1281, %v463_v12   ;;  %512 = vperm.xlu1 %1282, %v462_v20  }
  0x30   : > { %527 = vperm.xlu0 %1281, %v465_v13   ;;  %522 = vperm.xlu1 %1282, %v464_v21  }
  0x34   : > { %537 = vperm.xlu0 %1281, %v467_v14   ;;  %532 = vperm.xlu1 %1282, %v466_v22  }
  0x38   : > { %547 = vperm.xlu0 %1281, %v469_v15   ;;  %542 = vperm.xlu1 %1282, %v468_v23  }
  0x3c   : > { %1011 = vperm.xlu1 %1282, %v1008_v24  }
  0x93   : > { %v382_v25 = vpop.permute.xlu0 %381 }
  0x97   : > { %v478_v51 = vpop.permute.xlu1 %477  ;;  %v473_v53 = vpop.permute.xlu0 %472 }
  0x9b   : > { %v483_v56 = vpop.permute.xlu1 %482  ;;  %v488_v58 = vpop.permute.xlu0 %487 }
  0x9f   : > { %v493_v61 = vpop.permute.xlu1 %492  ;;  %v498_v63 = vpop.permute.xlu0 %497 }
  0xa3   : > { %v503_v3 = vpop.permute.xlu1 %502  ;;  %v508_v7 = vpop.permute.xlu0 %507 }
  0xa7   : > { %v513_v10 = vpop.permute.xlu1 %512  ;;  %v518_v12 = vpop.permute.xlu0 %517 }
  0xab   : > { %v523_v15 = vpop.permute.xlu1 %522  ;;  %v528_v19 = vpop.permute.xlu0 %527 }
  0xe1   : > { %v429_v26 = vpop.f32.mrf.mxu0 }
  0xe2   : > { %v430_v27 = vadd.f32 %v429_v26, %v382_v25 }
  0xe3   : > { %v431_v28 = vpop.f32.mrf.mxu0 }
  0xe4   : > { %v452_v29 = vpack.c.bf16 %v430_v27, %v430_v27  ;;  %v432_v30 = vadd.f32 %v431_v28, %v382_v25 }
  0xe5   : > { %v433_v31 = vpop.f32.mrf.mxu0 }
  0xe6   : > { %v453_v32 = vpack.c.bf16 %v432_v30, %v432_v30  ;;  %v615_v34 = vsel %vm388_vm0, %v452_v29, 0 }
  0xe7   : > { %v434_v33 = vpop.f32.mrf.mxu0 }
  0xe8   : > { %1206 = vmatprep.subr.msk.bf16.mxu1 %vm388_vm0, %v453_v32 }
  0xe9   : > { %635 = vmatpush1.bf16.msra.mxu1 %v615_v34 }
  0xec   : > { %1207 = vmatmul.mubr.msk.bf16.vlgmr.msra.gmra.mxu1 %vm384_vm1, %v1283_v35 }
  0xed   : > { %662 = vmatprep.mubr.bf16.mxu1 %v1437_v0 }
  0xf4   : > { %1208 = vmatmul.mubr.msk.bf16.gmra.mxu1 %vm384_vm1, %v1284_v36 }
  0xf5   : > { %672 = vmatprep.mubr.bf16.mxu1 %v1437_v0 }
  0xfc   : > { %1209 = vmatmul.mubr.msk.bf16.gmra.mxu1 %vm384_vm1, %v1285_v37 }
  0xfd   : > { %682 = vmatprep.mubr.bf16.mxu1 %v1437_v0 }
 0x104   : > { %1210 = vmatmul.mubr.msk.bf16.gmra.mxu1 %vm384_vm1, %v1286_v38  ;;  %v533_v38 = vpop.permute.xlu1 %532 }
 0x105   : > { %692 = vmatprep.mubr.bf16.mxu1 %v1437_v0 }
 0x10c   : > { %1211 = vmatmul.mubr.msk.bf16.gmra.mxu1 %vm384_vm1, %v1287_v39 }
 0x10d   : > { %702 = vmatprep.mubr.bf16.mxu1 %v1437_v0 }
 0x114   : > { %1212 = vmatmul.mubr.msk.bf16.gmra.mxu1 %vm384_vm1, %v1288_v40 }
 0x115   : > { %712 = vmatprep.mubr.bf16.mxu1 %v1437_v0 }
 0x11c   : > { %1213 = vmatmul.mubr.msk.bf16.gmra.mxu1 %vm384_vm1, %v1289_v41 }
 0x11d   : > { %722 = vmatprep.mubr.bf16.mxu1 %v1437_v0 }
 0x124   : > { %1214 = vmatmul.mubr.msk.bf16.gmra.mxu1 %vm384_vm1, %v1290_v42 }
 0x1ac   : > { %v654_v43 = vpop.f32.mrf.mxu1 }
 0x1ad   : > { %v1659_v23 = vadd.f32 %v654_v43, %v473_v53 }
 0x1ae   : > { %v656_v44 = vpop.f32.mrf.mxu1 }
 0x1af   : > { %v1667_v27 = vadd.f32 %v656_v44, %v473_v53 }
 0x1b0   : > { %v658_v45 = vpop.f32.mrf.mxu1 }
 0x1b1   : > { %v1661_v24 = vadd.f32 %v658_v45, %v478_v51 }
 0x1b2   : > { %v660_v46 = vpop.f32.mrf.mxu1 }
 0x1b3   : > { %v1669_v28 = vadd.f32 %v660_v46, %v478_v51  ;;  %v538_v46 = vpop.permute.xlu0 %537 }
 0x1b4   : > { %v664_v47 = vpop.f32.mrf.mxu1 }
 0x1b5   : > { %v1651_v17 = vadd.f32 %v664_v47, %v483_v56 }
 0x1b6   : > { %v666_v48 = vpop.f32.mrf.mxu1 }
 0x1b7   : > { %v1655_v20 = vadd.f32 %v666_v48, %v483_v56  ;;  %v733_v32 = vmax.f32 %v1659_v23, %v1651_v17 }
 0x1b8   : > { %v668_v49 = vpop.f32.mrf.mxu1 }
 0x1b9   : > { %v1653_v18 = vadd.f32 %v668_v49, %v488_v58  ;;  %v754_v36 = vmax.f32 %v1667_v27, %v1655_v20 }
 0x1ba   : > { %v670_v50 = vpop.f32.mrf.mxu1 }
 0x1bb   : > { %v1657_v21 = vadd.f32 %v670_v50, %v488_v58  ;;  %v734_v33 = vmax.f32 %v1661_v24, %v1653_v18 }
 0x1bc   : > { %v674_v52 = vpop.f32.mrf.mxu1 }
 0x1bd   : > { %v1663_v25 = vadd.f32 %v674_v52, %v493_v61  ;;  %v755_v37 = vmax.f32 %v1669_v28, %v1657_v21 }
 0x1be   : > { %v676_v54 = vpop.f32.mrf.mxu1 }
 0x1bf   : > { %v1671_v29 = vadd.f32 %v676_v54, %v493_v61  ;;  %v735_v42 = vmax.f32 %v733_v32, %v1663_v25 }
 0x1c0   : > { %v678_v55 = vpop.f32.mrf.mxu1 }
 0x1c1   : > { %v1665_v26 = vadd.f32 %v678_v55, %v498_v63  ;;  %v756_v47 = vmax.f32 %v754_v36, %v1671_v29 }
 0x1c2   : > { %v680_v57 = vpop.f32.mrf.mxu1 }
 0x1c3   : > { %v1673_v30 = vadd.f32 %v680_v57, %v498_v63  ;;  %v736_v43 = vmax.f32 %v734_v33, %v1665_v26 }
 0x1c4   : > { %v684_v59 = vpop.f32.mrf.mxu1 }
 0x1c5   : > { %v1679_v34 = vadd.f32 %v684_v59, %v503_v3  ;;  %v757_v48 = vmax.f32 %v755_v37, %v1673_v30 }
 0x1c6   : > { %v686_v60 = vpop.f32.mrf.mxu1 }
 0x1c7   : > { %v1687_v39 = vadd.f32 %v686_v60, %v503_v3  ;;  %v737_v52 = vmax.f32 %v735_v42, %v1679_v34 }
 0x1c8   : > { %v688_v62 = vpop.f32.mrf.mxu1 }
 0x1c9   : > { %v1681_v35 = vadd.f32 %v688_v62, %v508_v7  ;;  %v758_v56 = vmax.f32 %v756_v47, %v1687_v39 }
 0x1ca   : > { %v690_v1 = vpop.f32.mrf.mxu1 }
 0x1cb   : > { %v1689_v40 = vadd.f32 %v690_v1, %v508_v7  ;;  %v738_v53 = vmax.f32 %v736_v43, %v1681_v35 }
 0x1cc   : > { %v694_v2 = vpop.f32.mrf.mxu1 }
 0x1cd   : > { %v1693_v44 = vadd.f32 %v694_v2, %v513_v10  ;;  %v759_v57 = vmax.f32 %v757_v48, %v1689_v40  ;;  %v543_v2 = vpop.permute.xlu1 %542 }
 0x1ce   : > { %v696_v6 = vpop.f32.mrf.mxu1 }
 0x1cf   : > { %v1699_v49 = vadd.f32 %v696_v6, %v513_v10  ;;  %v739_v61 = vmax.f32 %v737_v52, %v1693_v44 }
 0x1d0   : > { %v698_v8 = vpop.f32.mrf.mxu1 }
 0x1d1   : > { %v1695_v45 = vadd.f32 %v698_v8, %v518_v12  ;;  %v760_v3 = vmax.f32 %v758_v56, %v1699_v49 }
 0x1d2   : > { %v700_v9 = vpop.f32.mrf.mxu1 }
 0x1d3   : > { %v1701_v50 = vadd.f32 %v700_v9, %v518_v12  ;;  %v740_v62 = vmax.f32 %v738_v53, %v1695_v45 }
 0x1d4   : > { %v704_v11 = vpop.f32.mrf.mxu1 }
 0x1d5   : > { %v1705_v54 = vadd.f32 %v704_v11, %v523_v15  ;;  %v761_v6 = vmax.f32 %v759_v57, %v1701_v50 }
 0x1d6   : > { %v706_v13 = vpop.f32.mrf.mxu1 }
 0x1d7   : > { %v1711_v58 = vadd.f32 %v706_v13, %v523_v15  ;;  %v741_v9 = vmax.f32 %v739_v61, %v1705_v54  ;;  %v548_v13 = vpop.permute.xlu0 %547 }
 0x1d8   : > { %v708_v14 = vpop.f32.mrf.mxu1 }
 0x1d9   : > { %v1707_v55 = vadd.f32 %v708_v14, %v528_v19  ;;  %v762_v14 = vmax.f32 %v760_v3, %v1711_v58 }
 0x1da   : > { %v710_v16 = vpop.f32.mrf.mxu1 }
 0x1db   : > { %v1713_v59 = vadd.f32 %v710_v16, %v528_v19  ;;  %v742_v10 = vmax.f32 %v740_v62, %v1707_v55 }
 0x1dc   : > { %v714_v22 = vpop.f32.mrf.mxu1 }
 0x1dd   : > { %v1717_v63 = vadd.f32 %v714_v22, %v533_v38  ;;  %v763_v15 = vmax.f32 %v761_v6, %v1713_v59 }
 0x1de   : > { %v716_v31 = vpop.f32.mrf.mxu1 }
 0x1df   : > { %v1723_v7 = vadd.f32 %v716_v31, %v533_v38  ;;  %v743_v19 = vmax.f32 %v741_v9, %v1717_v63 }
 0x1e0   : > { %v718_v41 = vpop.f32.mrf.mxu1 }
 0x1e1   : > { %v1719_v1 = vadd.f32 %v718_v41, %v538_v46  ;;  %v764_v33 = vmax.f32 %v762_v14, %v1723_v7 }
 0x1e2   : > { %v720_v51 = vpop.f32.mrf.mxu1 }
 0x1e3   : > { %v1727_v11 = vadd.f32 %v720_v51, %v538_v46  ;;  %v744_v22 = vmax.f32 %v742_v10, %v1719_v1 }
 0x1e4   : > { %v724_v60 = vpop.f32.mrf.mxu1 }
 0x1e5   : > { %v1729_v12 = vadd.f32 %v724_v60, %v543_v2  ;;  %v765_v37 = vmax.f32 %v763_v15, %v1727_v11 }
 0x1e6   : > { %v726_v8 = vpop.f32.mrf.mxu1 }
 0x1e7   : > { %v1735_v31 = vadd.f32 %v726_v8, %v543_v2  ;;  %v745_v38 = vmax.f32 %v743_v19, %v1729_v12 }
 0x1e8   : > { %v728_v16 = vpop.f32.mrf.mxu1 }
 0x1e9   : > { %v1737_v32 = vadd.f32 %v728_v16, %v548_v13  ;;  %v766_v43 = vmax.f32 %v764_v33, %v1735_v31 }
 0x1ea   : > { %v730_v36 = vpop.f32.mrf.mxu1 }
 0x1eb   : > { %v746_v41 = vmax.f32 %v744_v22, %v1737_v32  ;;  %v1743_v42 = vadd.f32 %v730_v36, %v548_v13 }
 0x1ed   : > { %v747_v46 = vmax.f32 %v745_v38, %v746_v41  ;;  %v767_v47 = vmax.f32 %v765_v37, %v1743_v42 }
 0x1ef   : > { %v748_v48 = vrot.slane %v747_v46, 4  ;;  %v768_v51 = vmax.f32 %v766_v43, %v767_v47 }
 0x1f1   : > { %v749_v52 = vmax.f32 %v747_v46, %v748_v48  ;;  %v769_v53 = vrot.slane %v768_v51, 4 }
 0x1f3   : > { %v750_v56 = vrot.slane %v749_v52, 2  ;;  %v770_v60 = vmax.f32 %v768_v51, %v769_v53 }
 0x1f5   : > { %v751_v57 = vmax.f32 %v749_v52, %v750_v56  ;;  %v771_v2 = vrot.slane %v770_v60, 2 }
 0x1f7   : > { %v752_v61 = vrot.slane %v751_v57, 1  ;;  %v772_v9 = vmax.f32 %v770_v60, %v771_v2 }
 0x1f9   : > { %v1747_v62 = vmax.f32 %v751_v57, %v752_v61  ;;  %v773_v19 = vrot.slane %v772_v9, 1 }
 0x1fb   : > { %v775_v3 = vsub.f32 %v1659_v23, %v1747_v62  ;;  %v777_v6 = vsub.f32 %v1661_v24, %v1747_v62  ;;  %v779_v8 = vsub.f32 %v1651_v17, %v1747_v62  ;;  %v781_v10 = vsub.f32 %v1653_v18, %v1747_v62 }
 0x1fc   : > { %v783_v15 = vsub.f32 %v1663_v25, %v1747_v62  ;;  %v785_v23 = vsub.f32 %v1665_v26, %v1747_v62  ;;  %v787_v17 = vsub.f32 %v1679_v34, %v1747_v62  ;;  %v1763_v33 = vmax.f32 %v772_v9, %v773_v19 }
 0x1fd   : > { %v807_v13 = vmul.f32 1.442695, %v775_v3  ;;  %v811_v14 = vmul.f32 1.442695, %v777_v6  ;;  %v815_v16 = vmul.f32 1.442695, %v779_v8  ;;  %v789_v18 = vsub.f32 %v1681_v35, %v1747_v62 }
 0x1fe   : > { %v819_v24 = vmul.f32 1.442695, %v781_v10  ;;  %v823_v22 = vmul.f32 1.442695, %v783_v15  ;;  %v827_v25 = vmul.f32 1.442695, %v785_v23  ;;  %v791_v36 = vsub.f32 %v1693_v44, %v1747_v62 }
 0x1ff   : > { %1291 = vpow2.f32 %v807_v13  ;;  %v793_v26 = vsub.f32 %v1695_v45, %v1747_v62  ;;  %v831_v37 = vmul.f32 1.442695, %v787_v17  ;;  %v776_v34 = vsub.f32 %v1667_v27, %v1763_v33 }
 0x200   : > { %1293 = vpow2.f32 %v811_v14  ;;  %v835_v38 = vmul.f32 1.442695, %v789_v18  ;;  %v778_v41 = vsub.f32 %v1669_v28, %v1763_v33  ;;  %v795_v35 = vsub.f32 %v1705_v54, %v1747_v62 }
 0x201   : > { %1295 = vpow2.f32 %v815_v16  ;;  %v839_v43 = vmul.f32 1.442695, %v791_v36  ;;  %v843_v46 = vmul.f32 1.442695, %v793_v26  ;;  %v780_v44 = vsub.f32 %v1655_v20, %v1763_v33 }
 0x202   : > { %1297 = vpow2.f32 %v819_v24  ;;  %v797_v45 = vsub.f32 %v1707_v55, %v1747_v62  ;;  %v809_v47 = vmul.f32 1.442695, %v776_v34  ;;  %v782_v27 = vsub.f32 %v1657_v21, %v1763_v33 }
 0x203   : > { %1299 = vpow2.f32 %v823_v22  ;;  %v813_v28 = vmul.f32 1.442695, %v778_v41  ;;  %v799_v54 = vsub.f32 %v1717_v63, %v1747_v62  ;;  %v847_v52 = vmul.f32 1.442695, %v795_v35 }
 0x204   : > { %1301 = vpow2.f32 %v827_v25  ;;  %v784_v55 = vsub.f32 %v1671_v29, %v1763_v33  ;;  %v817_v53 = vmul.f32 1.442695, %v780_v44  ;;  %v801_v21 = vsub.f32 %v1719_v1, %v1747_v62 }
 0x205   : > { %1303 = vpow2.f32 %v831_v37  ;;  %v851_v57 = vmul.f32 1.442695, %v797_v45  ;;  %v786_v63 = vsub.f32 %v1673_v30, %v1763_v33  ;;  %v821_v61 = vmul.f32 1.442695, %v782_v27 }
 0x206   : > { %1305 = vpow2.f32 %v835_v38  ;;  %v803_v29 = vsub.f32 %v1729_v12, %v1747_v62  ;;  %v855_v3 = vmul.f32 1.442695, %v799_v54  ;;  %v788_v1 = vsub.f32 %v1687_v39, %v1763_v33 }
 0x207   : > { %1307 = vpow2.f32 %v839_v43  ;;  %v825_v8 = vmul.f32 1.442695, %v784_v55  ;;  %v805_v30 = vsub.f32 %v1737_v32, %v1747_v62  ;;  %v859_v10 = vmul.f32 1.442695, %v801_v21 }
 0x208   : > { %1309 = vpow2.f32 %v843_v46  ;;  %v790_v12 = vsub.f32 %v1689_v40, %v1763_v33  ;;  %v829_v14 = vmul.f32 1.442695, %v786_v63  ;;  %v863_v39 = vmul.f32 1.442695, %v803_v29 }
 0x209   : > { %1311 = vpow2.f32 %v809_v47  ;;  %v792_v19 = vsub.f32 %v1699_v49, %v1763_v33  ;;  %v833_v32 = vmul.f32 1.442695, %v788_v1  ;;  %v867_v23 = vmul.f32 1.442695, %v805_v30 }
 0x20a   : > { %1313 = vpow2.f32 %v813_v28  ;;  %v794_v40 = vsub.f32 %v1701_v50, %v1763_v33  ;;  %v837_v17 = vmul.f32 1.442695, %v790_v12  ;;  %v796_v25 = vsub.f32 %v1711_v58, %v1763_v33 }
 0x20b   : > { %1315 = vpow2.f32 %v847_v52  ;;  %v841_v36 = vmul.f32 1.442695, %v792_v19  ;;  %v798_v34 = vsub.f32 %v1713_v59, %v1763_v33  ;;  %v800_v35 = vsub.f32 %v1723_v7, %v1763_v33 }
 0x20c   : > { %v1781_v48 = vpop.eup %1291  ;;  %1317 = vpow2.f32 %v817_v53  ;;  %v845_v38 = vmul.f32 1.442695, %v794_v40  ;;  %v849_v46 = vmul.f32 1.442695, %v796_v25  ;;  %v802_v59 = vsub.f32 %v1727_v11, %v1763_v33 }
 0x20d   : > { %v1785_v51 = vpop.eup %1293  ;;  %1319 = vpow2.f32 %v851_v57  ;;  %v853_v7 = vmul.f32 1.442695, %v798_v34  ;;  %v804_v52 = vsub.f32 %v1735_v31, %v1763_v33  ;;  %v857_v53 = vmul.f32 1.442695, %v800_v35 }
 0x20e   : > { %v871_v20 = vadd.f32 %v1785_v51, %v1781_v48  ;;  %v1793_v56 = vpop.eup %1295  ;;  %1321 = vpow2.f32 %v821_v61  ;;  %v806_v57 = vsub.f32 %v1743_v42, %v1763_v33  ;;  %v861_v61 = vmul.f32 1.442695, %v802_v59 }
 0x20f   : > { %v1800_v2 = vpop.eup %1297  ;;  %1323 = vpow2.f32 %v855_v3  ;;  %v865_v1 = vmul.f32 1.442695, %v804_v52 }
 0x210   : > { %v872_v60 = vadd.f32 %v1793_v56, %v871_v20  ;;  %v1807_v9 = vpop.eup %1299  ;;  %1325 = vpow2.f32 %v825_v8 }
 0x211   : > { %v1814_v15 = vpop.eup %1301  ;;  %1327 = vpow2.f32 %v859_v10  ;;  %v869_v10 = vmul.f32 1.442695, %v806_v57 }
 0x212   : > { %v873_v6 = vadd.f32 %v1800_v2, %v872_v60  ;;  %v1819_v62 = vpop.eup %1303  ;;  %1329 = vpow2.f32 %v829_v14 }
 0x213   : > { %v1824_v22 = vpop.eup %1305  ;;  %1331 = vpow2.f32 %v863_v39 }
 0x214   : > { %v874_v13 = vadd.f32 %v1807_v9, %v873_v6  ;;  %v1826_v18 = vpop.eup %1307  ;;  %1333 = vpow2.f32 %v833_v32 }
 0x215   : > { %v1831_v26 = vpop.eup %1309  ;;  %1335 = vpow2.f32 %v867_v23 }
 0x216   : > { %v875_v16 = vadd.f32 %v1814_v15, %v874_v13  ;;  %v1833_v37 = vpop.eup %1311  ;;  %1337 = vpow2.f32 %v837_v17 }
 0x217   : > { %v1838_v41 = vpop.eup %1313  ;;  %1339 = vpow2.f32 %v841_v36 }
 0x218   : > { %v876_v24 = vadd.f32 %v1819_v62, %v875_v16  ;;  %v1842_v58 = vpop.eup %1315  ;;  %v892_v44 = vadd.f32 %v1838_v41, %v1833_v37  ;;  %1341 = vpow2.f32 %v845_v38 }
 0x219   : > { %v1847_v45 = vpop.eup %1317  ;;  %1343 = vpow2.f32 %v849_v46 }
 0x21a   : > { %v877_v49 = vadd.f32 %v1824_v22, %v876_v24  ;;  %v1851_v47 = vpop.eup %1319  ;;  %v893_v28 = vadd.f32 %v1847_v45, %v892_v44  ;;  %1345 = vpow2.f32 %v853_v7 }
 0x21b   : > { %v1855_v54 = vpop.eup %1321  ;;  %1347 = vpow2.f32 %v857_v53 }
 0x21c   : > { %v878_v50 = vadd.f32 %v1826_v18, %v877_v49  ;;  %v1859_v20 = vpop.eup %1323  ;;  %v894_v11 = vadd.f32 %v1855_v54, %v893_v28  ;;  %1349 = vpow2.f32 %v861_v61 }
 0x21d   : > { %v1863_v21 = vpop.eup %1325  ;;  %1351 = vpow2.f32 %v865_v1 }
 0x21e   : > { %v879_v43 = vadd.f32 %v1831_v26, %v878_v50  ;;  %v1867_v60 = vpop.eup %1327  ;;  %v895_v31 = vadd.f32 %v1863_v21, %v894_v11  ;;  %1353 = vpow2.f32 %v869_v10 }
 0x21f   : > { %v1871_v29 = vpop.eup %1329 }
 0x220   : > { %v880_v27 = vadd.f32 %v1842_v58, %v879_v43  ;;  %v1332_v3 = vpop.eup %1331  ;;  %v896_v8 = vadd.f32 %v1871_v29, %v895_v31 }
 0x221   : > { %v1875_v30 = vpop.eup %1333 }
 0x222   : > { %v881_v55 = vadd.f32 %v1851_v47, %v880_v27  ;;  %v1336_v42 = vpop.eup %1335  ;;  %v897_v13 = vadd.f32 %v1875_v30, %v896_v8 }
 0x223   : > { %v1878_v12 = vpop.eup %1337 }
 0x224   : > { %v882_v63 = vadd.f32 %v1859_v20, %v881_v55  ;;  %v898_v39 = vadd.f32 %v1878_v12, %v897_v13  ;;  %v1881_v16 = vpop.eup %1339 }
 0x225   : > { %v1884_v23 = vpop.eup %1341 }
 0x226   : > { %v883_v6 = vadd.f32 %v1867_v60, %v882_v63  ;;  %v899_v32 = vadd.f32 %v1881_v16, %v898_v39  ;;  %v1344_v17 = vpop.eup %1343 }
 0x227   : > { %v1346_v36 = vpop.eup %1345 }
 0x228   : > { %v884_v33 = vadd.f32 %v1332_v3, %v883_v6  ;;  %v900_v40 = vadd.f32 %v1884_v23, %v899_v32  ;;  %v1348_v38 = vpop.eup %1347 }
 0x229   : > { %v1350_v46 = vpop.eup %1349 }
 0x22a   : > { %v885_v14 = vadd.f32 %v1336_v42, %v884_v33  ;;  %v901_v25 = vadd.f32 %v1344_v17, %v900_v40  ;;  %v1352_v27 = vpop.eup %1351 }
 0x22b   : > { %v1354_v28 = vpop.eup %1353 }
 0x22c   : > { %v886_v19 = vrot.slane %v885_v14, 4  ;;  %v902_v34 = vadd.f32 %v1346_v36, %v901_v25 }
 0x22e   : > { %v887_v24 = vadd.f32 %v886_v19, %v885_v14  ;;  %v903_v43 = vadd.f32 %v1348_v38, %v902_v34 }
 0x230   : > { %v888_v49 = vrot.slane %v887_v24, 2  ;;  %v904_v59 = vadd.f32 %v1350_v46, %v903_v43 }
 0x232   : > { %v889_v50 = vadd.f32 %v888_v49, %v887_v24  ;;  %v905_v7 = vadd.f32 %v1352_v27, %v904_v59 }
 0x234   : > { %v890_v35 = vrot.slane %v889_v50, 1  ;;  %v906_v52 = vadd.f32 %v1354_v28, %v905_v7 }
 0x236   : > { %v891_v44 = vadd.f32 %v890_v35, %v889_v50  ;;  %v907_v55 = vrot.slane %v906_v52, 4 }
 0x238   : > { %1355 = vrcp.f32 %v891_v44  ;;  %v908_v53 = vadd.f32 %v907_v55, %v906_v52 }
 0x23a   : > { %v909_v11 = vrot.slane %v908_v53, 2 }
 0x23c   : > { %v910_v57 = vadd.f32 %v909_v11, %v908_v53 }
 0x23e   : > { %v911_v63 = vrot.slane %v910_v57, 1 }
 0x240   : > { %v912_v31 = vadd.f32 %v911_v63, %v910_v57  ;;  %v1005_v57 = vld [vmem:[%s1975_s6] sm:$0xf] }
 0x242   : > { %1357 = vrcp.f32 %v912_v31 }
 0x245   : > { %v1356_v61 = vpop.eup %1355 }
 0x246   : > { %v931_v6 = vmul.f32 %v1356_v61, %v1826_v18  ;;  %v933_v1 = vmul.f32 %v1356_v61, %v1831_v26  ;;  %v927_v8 = vmul.f32 %v1356_v61, %v1819_v62  ;;  %v929_v33 = vmul.f32 %v1356_v61, %v1824_v22 }
 0x247   : > { %v923_v10 = vmul.f32 %v1356_v61, %v1807_v9  ;;  %v925_v14 = vmul.f32 %v1356_v61, %v1814_v15  ;;  %v919_v39 = vmul.f32 %v1356_v61, %v1793_v56  ;;  %v921_v19 = vmul.f32 %v1356_v61, %v1800_v2 }
 0x248   : > { %v956_v13 = vpack.c.bf16 %v933_v1, %v931_v6  ;;  %v954_v32 = vpack.c.bf16 %v929_v33, %v927_v8  ;;  %v915_v24 = vmul.f32 %v1356_v61, %v1781_v48  ;;  %v917_v18 = vmul.f32 %v1356_v61, %v1785_v51 }
 0x249   : > { %v952_v40 = vpack.c.bf16 %v925_v14, %v923_v10  ;;  %v950_v26 = vpack.c.bf16 %v921_v19, %v919_v39  ;;  %v943_v62 = vmul.f32 %v1356_v61, %v1332_v3  ;;  %v945_v25 = vmul.f32 %v1356_v61, %v1336_v42 }
 0x24a   : > { %v948_v49 = vpack.c.bf16 %v917_v18, %v915_v24  ;;  %v939_v56 = vmul.f32 %v1356_v61, %v1859_v20  ;;  %v941_v2 = vmul.f32 %v1356_v61, %v1867_v60 }
 0x24b   : > { %v962_v15 = vpack.c.bf16 %v945_v25, %v943_v62 }
 0x24f   : > { %v1358_v22 = vpop.eup %1357 }
 0x250   : > { %v944_v50 = vmul.f32 %v1358_v22, %v1352_v27  ;;  %v946_v9 = vmul.f32 %v1358_v22, %v1354_v28  ;;  %v940_v34 = vmul.f32 %v1358_v22, %v1348_v38  ;;  %v942_v35 = vmul.f32 %v1358_v22, %v1350_v46 }
 0x251   : > { %v936_v44 = vmul.f32 %v1358_v22, %v1344_v17  ;;  %v928_v48 = vmul.f32 %v1358_v22, %v1875_v30  ;;  %v930_v51 = vmul.f32 %v1358_v22, %v1878_v12  ;;  %v938_v7 = vmul.f32 %v1358_v22, %v1346_v36 }
 0x252   : > { %v963_v43 = vpack.c.bf16 %v946_v9, %v944_v50  ;;  %v961_v59 = vpack.c.bf16 %v942_v35, %v940_v34  ;;  %v924_v3 = vmul.f32 %v1358_v22, %v1863_v21  ;;  %v926_v42 = vmul.f32 %v1358_v22, %v1871_v29 }
 0x253   : > { %v955_v38 = vpack.c.bf16 %v930_v51, %v928_v48  ;;  %v920_v46 = vmul.f32 %v1358_v22, %v1847_v45  ;;  %v922_v20 = vmul.f32 %v1358_v22, %v1855_v54  ;;  %v916_v60 = vmul.f32 %v1358_v22, %v1833_v37 }
 0x254   : > { %964 = vmatprep.subr.bf16.mxu0 %v963_v43  ;;  %v953_v17 = vpack.c.bf16 %v926_v42, %v924_v3  ;;  %v918_v30 = vmul.f32 %v1358_v22, %v1838_v41  ;;  %v960_v27 = vpack.c.bf16 %v941_v2, %v939_v56  ;;  %v935_v36 = vmul.f32 %v1356_v61, %v1842_v58  ;;  %v947_v41 = vld [vmem:[%s370_s23] sm:$0xf]  ;;  %s1363_s23 = sshll.u32 %s1438_s30, 4  ;;  %s1364_s23 = int_to_ptr.vmem [resolvable:$false] %s1363_s23 }
 0x255   : > { %965 = vmatpush1.bf16.msra.mxu0 %v962_v15  ;;  %v951_v12 = vpack.c.bf16 %v922_v20, %v920_v46  ;;  %v937_v21 = vmul.f32 %v1356_v61, %v1851_v47  ;;  %v959_v28 = vpack.c.bf16 %v938_v7, %v936_v44  ;;  %v932_v45 = vmul.f32 %v1358_v22, %v1881_v16  ;;  %s1365_s21 = scalar_lea.vmem %s1364_s23, 512  ;;  %p1366_p1 = scmp.lt.s32.totalorder %s1086_s12, %s1364_s23 }
 0x256   : > { %966 = vmatprep.subr.bf16.mxu0 %v961_v59  ;;  %v949_v29 = vpack.c.bf16 %v918_v30, %v916_v60  ;;  %v934_v54 = vmul.f32 %v1358_v22, %v1884_v23  ;;  %p1367_p2 = scmp.lt.s32.totalorder %s1365_s21, %s1359_s22 }
 0x257   : > { %v958_v37 = vpack.c.bf16 %v937_v21, %v935_v36 }
 0x258   : > { %v957_v52 = vpack.c.bf16 %v934_v54, %v932_v45  ;;  %p1368_p3 = por %p1367_p2, %p1366_p1 }
 0x259   : > { %967 = vmatpush1.bf16.msra.mxu0 %v960_v27 }
 0x25a   : > { %968 = vmatprep.subr.bf16.mxu0 %v959_v28  ;;  %p1369_p5 = pnand %p1368_p3, %p1362_p0 }
 0x25d   : > { %969 = vmatpush1.bf16.msra.mxu0 %v958_v37 }
 0x25e   : > { %970 = vmatprep.subr.bf16.mxu0 %v957_v52 }
 0x261   : > { %971 = vmatpush1.bf16.msra.mxu0 %v956_v13 }
 0x262   : > { %972 = vmatprep.subr.bf16.mxu0 %v955_v38 }
 0x265   : > { %973 = vmatpush1.bf16.msra.mxu0 %v954_v32 }
 0x266   : > { %974 = vmatprep.subr.bf16.mxu0 %v953_v17 }
 0x269   : > { %975 = vmatpush1.bf16.msra.mxu0 %v952_v40 }
 0x26a   : > { %976 = vmatprep.subr.bf16.mxu0 %v951_v12 }
 0x26d   : > { %977 = vmatpush1.bf16.msra.mxu0 %v950_v26 }
 0x26e   : > { %978 = vmatprep.subr.bf16.mxu0 %v949_v29 }
 0x271   : > { %979 = vmatpush1.bf16.msra.mxu0 %v948_v49 }
 0x274   : > { %997 = vmatmul.mubr.bf16.vlgmr.msra.gmra.mxu0 %v947_v41 }
 0x275   : > { %1055 = vmatprep.mubr.bf16.mxu0 %v1437_v0  ;;  %v1012_v0 = vpop.permute.xlu1 %1011 }
 0x334   : > { %v998_v58 = vpop.f32.mrf.mxu0 }
 0x335   : > { %v1006_v47 = vpack.c.bf16 %v998_v58, %v998_v58 }
 0x336   : > { %v1000_v16 = vpop.f32.mrf.mxu0 }
 0x337   : > { %v1007_v23 = vpack.c.bf16 %v1000_v16, %v1000_v16  ;;  %v1018_v53 = vsel %vm388_vm0, %v1006_v47, 0 }
 0x338   : > { %v1002_v55 = vpop.f32.mrf.mxu0 }
 0x339   : > { %1215 = vmatprep.subr.msk.bf16.mxu0 %vm388_vm0, %v1007_v23 }
 0x33a   : > { %v1003_v11 = vpop.f32.mrf.mxu0  ;;  %1038 = vmatpush1.bf16.msra.mxu0 %v1018_v53 }
 0x33d   : > { %1216 = vmatmul.mubr.msk.bf16.vlgmr.msra.gmra.mxu0 %vm384_vm1, %v1005_v57 }
 0x3fd   : > { %v1057_v63 = vpop.f32.mrf.mxu0 }
 0x3fe   : > { %v1058_v61 = vadd.f32 %v1057_v63, %v1012_v0 }
 0x3ff   : > { %v1059_v31 = vpop.f32.mrf.mxu0 }
 0x400   : > { %v1064_v6 = vadd.f32 %v1058_v61, %v1568_v5  ;;  %v1060_v1 = vadd.f32 %v1059_v31, %v1012_v0 }
 0x401   : > { %v1061_v8 = vpop.f32.mrf.mxu0 }
 0x402   : > { %1066 = vst [vmem:[%s351_s11] sm:$0xff] %v1064_v6  ;;  %v1065_v33 = vadd.f32 %v1060_v1, %v1566_v4 }
 0x403   : > { %v1062_v10 = vpop.f32.mrf.mxu0 }
 0x404   : > { %1067 = vst [vmem:[%s351_s11 + $0x8] sm:$0xff] %v1065_v33 }
 0x405   : > { %1372 = shalt.err (!%p1369_p5)
}
 0x406   : > { %s1373_s5 = scalar_lea.hbm %s1929_s19, 256  ;;  %s1377_s26 = scalar_lea.hbm %s1977_s8, 512 }
 0x407   : > { %p1374_p6 = scmp.ne.s32.totalorder %s1929_s19, %s1373_s5  ;;  %p1378_p10 = scmp.lt.s32.totalorder %s1929_s19, %s1977_s8 }
 0x408   : > { %p1379_p11 = scmp.lt.s32.totalorder %s1377_s26, %s1373_s5 }
 0x409   : > { %p1375_p7 = pnand %p1374_p6, %p1524_p4 }
 0x40a   : > { %p1380_p12 = por %p1379_p11, %p1378_p10 }
 0x40b   : > { %p1376_p9 = pneg %p1375_p7 }
 0x40d   : > { %p1381_p13 = pnand %p1380_p12, %p1376_p9 }
 0x40f   : > { %1384 = shalt.err (!%p1381_p13)
}
 0x410   : > { %1225 = dma.vmem_to_hbm [thread:$0]  (%p1524_p4), %s1086_s12, 256, %s1929_s19, %s1069_s20  }
 0x411 PF: > { %p1231_p0 = scmp.ge.s32.totalorder %s1435_s10, 2  ;;  %s1097_s16 = sand.u32 1, %s1415_s27  }
 0x412   : > { %s1098_s22 = scalar_lea.sflag [#allocation3], %s1097_s16 }
 0x413   : > { %p1228_p1 = pnand %p1231_p0, %p1531_p8 }
 0x415   : > { %p1229_p2 = pneg %p1228_p1 }
 0x417   : > { %1410 = dma.done.wait (%p1229_p2), %s1098_s22, 256  }
 0x418   : > { %1412 = vsyncadd (%p1229_p2), %s1098_s22, 4294967040  ;;  %s21_s10 = sadd.s32 1, %s1435_s10   ;;  %s1982_s27 = smov %s1419_s28 }
 0x419   : > { %p18_p3 = scmp.ge.s32.totalorder %s21_s10, 4   ;;  %s1983_s28 = smov %s1423_s29 }
 0x41a   : > { %s1984_s29 = smov %s1537_s18  ;;  %s1985_s30 = smov %s1431_s9 }
 0x41b   : > { %s1986_s9 = smov %s1988_s13  ;;  %20 = sbr.rel (!%p18_p3) target bundleno = 6 (0x6), region = 93 }
 0x420   :  { %1103 = vsyncpa [#allocation3], 1 }
 0x421   :  { %1105 = vsyncpa [#allocation3 + $0x1], 1 }

</bundles_post_ra>
